<compile_context>
chip_gen: v6e
topology: v6e:2x2x1
jax: 0.10.0
libtpu: 0.0.40
codegen_flags: <defaults>
</compile_context>

<pallas_src>
import functools

import jax
import jax.numpy as jnp
from jax.experimental import pallas as pl
from jax.experimental.pallas import tpu as pltpu

_LANES = 128


def _round_up(x, m):
    return (x + m - 1) // m * m


def _elr_tile_kernel(index_ref,                        # scalar prefetch (SMEM), (B_pad,)
                     logits_ref, label_ref, tgt_ref,   # inputs  (VMEM blocks)
                     part_ref, newtgt_ref,             # outputs (VMEM blocks)
                     new_scr,                          # VMEM scratch (TB, 128) f32
                     *, beta, num_class, batch, tile_rows):
    t = pl.program_id(0)
    TB = tile_rows
    C = num_class

    # --- init resident outputs on the first tile ---
    @pl.when(t == 0)
    def _():
        part_ref[...] = jnp.zeros_like(part_ref)
        # Untouched rows keep their previous value; indexed rows overwritten below.
        newtgt_ref[...] = tgt_ref[...].astype(newtgt_ref.dtype)

    base = t * TB

    lane = jax.lax.broadcasted_iota(jnp.int32, (TB, _LANES), 1)
    lane_valid = lane < C
    row_ids = jax.lax.broadcasted_iota(jnp.int32, (TB, 1), 0) + base
    row_valid = row_ids < batch

    # --- numerically stable softmax over classes (lane axis), pad lanes masked ---
    logits = jnp.where(lane_valid, logits_ref[...].astype(jnp.float32), -1e30)
    m = jnp.max(logits, axis=1, keepdims=True)                 # (TB, 1)
    ex = jnp.exp(logits - m)                                   # pad lanes -> 0
    denom = jnp.sum(ex, axis=1, keepdims=True)                 # (TB, 1)
    y_pred = jnp.where(lane_valid,
                       jnp.clip(ex / denom, 1e-4, 1.0 - 1e-4),
                       0.0)
    y_norm = y_pred / jnp.sum(y_pred, axis=1, keepdims=True)   # pad lanes stay 0

    # --- cross-entropy per row (vectorized over sublanes, no one-hot matmul) ---
    lbl = label_ref[...]                                       # (TB, 1) int32
    picked = jnp.sum(jnp.where(lane == lbl, logits, 0.0), axis=1, keepdims=True)
    ce_rows = (m + jnp.log(denom)) - picked                    # (TB, 1)

    # --- EMA gather / scatter of the target rows.  Statically unrolled loop with
    #     dynamic leading-dim indexing into the resident VMEM target buffer
    #     (no per-row HBM DMAs).  Gather reads the *pre-update* buffer (tgt_ref). ---
    for r in range(TB):
        idx = index_ref[base + r]                              # SMEM scalar read
        old_r = tgt_ref[idx].astype(jnp.float32)               # (1, 128)
        new_r = beta * old_r + (1.0 - beta) * y_norm[r:r + 1, :]
        new_scr[r:r + 1, :] = new_r                            # static-offset store

        @pl.when(base + r < batch)                             # skip padded rows
        def _():
            newtgt_ref[idx] = new_r.astype(newtgt_ref.dtype)

    new_rows = new_scr[...]                                    # (TB, 128)

    # --- ELR regularizer per row (uses the updated rows) ---
    inner = jnp.sum(new_rows * y_pred, axis=1, keepdims=True)  # (TB, 1)
    inner = jnp.where(row_valid, inner, 0.0)                   # pad rows -> log(1)=0
    elr_rows = jnp.log(1.0 - inner)

    # --- per-tile partial sums accumulated into a resident lane-dense row ---
    ce_sum = jnp.sum(jnp.where(row_valid, ce_rows, 0.0))
    elr_sum = jnp.sum(elr_rows)
    out_lane = jax.lax.broadcasted_iota(jnp.int32, (1, _LANES), 1)
    part_ref[...] += (jnp.where(out_lane == 0, ce_sum, 0.0)
                      + jnp.where(out_lane == 1, elr_sum, 0.0))


def elr_loss(output, label, index, target, *, beta=0.7, lmbda=3.0, tile_rows=128):
    """Returns (final_loss scalar, updated target buffer)."""
    B, C = output.shape
    N, Ct = target.shape
    assert Ct == C and C <= _LANES, "num_class must be <= 128 for this kernel"

    # Tile of rows per grid step (bounded unroll for the in-kernel gather/scatter).
    TB = min(_round_up(B, 8), _round_up(tile_rows, 8))
    B_pad = _round_up(B, TB)
    num_tiles = B_pad // TB

    # Lane-pad the class axis to 128 and row-pad the batch to a multiple of TB.
    logits_p = jnp.pad(output, ((0, B_pad - B), (0, _LANES - C)))
    label_p = jnp.pad(label.astype(jnp.int32), (0, B_pad - B)).reshape(B_pad, 1)
    index_p = jnp.pad(index.astype(jnp.int32), (0, B_pad - B))
    target_p = jnp.pad(target.reshape(N, 1, C), ((0, 0), (0, 0), (0, _LANES - C)))

    kernel = functools.partial(_elr_tile_kernel, beta=float(beta),
                               num_class=C, batch=B, tile_rows=TB)

    grid_spec = pltpu.PrefetchScalarGridSpec(
        num_scalar_prefetch=1,               # index -> SMEM
        grid=(num_tiles,),
        in_specs=[
            # logits tile (TB rows x 128 lanes)
            pl.BlockSpec((TB, _LANES), lambda t, idx: (t, 0)),
            # labels tile (TB rows)
            pl.BlockSpec((TB, 1), lambda t, idx: (t, 0)),
            # full target buffer, resident across the grid
            pl.BlockSpec((N, 1, _LANES), lambda t, idx: (0, 0, 0)),
        ],
        out_specs=(
            # per-kernel loss partial sums (lane 0 = CE, lane 1 = ELR), resident
            pl.BlockSpec((1, _LANES), lambda t, idx: (0, 0)),
            # full updated target buffer, resident, written back once at the end
            pl.BlockSpec((N, 1, _LANES), lambda t, idx: (0, 0, 0)),
        ),
        scratch_shapes=[pltpu.VMEM((TB, _LANES), jnp.float32)],
    )

    part, new_tgt_p = pl.pallas_call(
        kernel,
        out_shape=(
            jax.ShapeDtypeStruct((1, _LANES), jnp.float32),
            jax.ShapeDtypeStruct((N, 1, _LANES), target.dtype),
        ),
        grid_spec=grid_spec,
        compiler_params=pltpu.CompilerParams(
            # Resident (revisited) outputs across the grid + scattered target
            # rows -> serial axis (also avoids the v7x cross-core write race).
            dimension_semantics=("arbitrary",),
        ),
    )(index_p, logits_p, label_p, target_p)

    ce = part[0, 0] / B
    elr = part[0, 1] / B
    loss = ce + lmbda * elr
    new_target = new_tgt_p[:, 0, :C]
    return loss, new_target


def _reference(output, label, index, target, beta=0.7, lmbda=3.0):
    """Pure-JAX reference mirroring the PyTorch forward, for a sanity check."""
    y_pred = jax.nn.softmax(output, axis=1)
    y_pred = jnp.clip(y_pred, 1e-4, 1.0 - 1e-4)
    y_norm = y_pred / jnp.sum(y_pred, axis=1, keepdims=True)
    new_rows = beta * target[index] + (1.0 - beta) * y_norm
    new_target = target.at[index].set(new_rows)
    logp = jax.nn.log_softmax(output, axis=1)
    ce = -jnp.mean(jnp.take_along_axis(logp, label[:, None], axis=1))
    elr = jnp.mean(jnp.log(1.0 - jnp.sum(new_rows * y_pred, axis=1)))
    return ce + lmbda * elr, new_target


if __name__ == "__main__":
    key = jax.random.PRNGKey(0)
    k1, k2, k3 = jax.random.split(key, 3)

    num_examp = 32
    num_class = 10
    B = 8

    # Deterministic synthetic inputs / state (no checkpoint load).
    output = jax.random.normal(k1, (B, num_class), dtype=jnp.float32)
    label = jax.random.randint(k2, (B,), 0, num_class, dtype=jnp.int32)
    index = jax.random.permutation(k3, num_examp)[:B].astype(jnp.int32)
    target = jnp.zeros((num_examp, num_class), dtype=jnp.float32)  # module buffer

    loss, new_target = elr_loss(output, label, index, target, beta=0.7, lmbda=3.0)
    loss = jax.block_until_ready(loss)
    new_target = jax.block_until_ready(new_target)

    ref_loss, ref_target = _reference(output, label, index, target)
    assert jnp.allclose(loss, ref_loss, atol=1e-5, rtol=1e-5), (loss, ref_loss)
    assert jnp.allclose(new_target, ref_target, atol=1e-5, rtol=1e-5)

    print("KERNEL_OK")
</pallas_src>

<mosaic_0001>
module attributes {stable_mosaic.version = 11 : i64} {
  func.func @_elr_tile_kernel(%arg0: i32, %arg1: memref<8xi32, #tpu.memory_space<smem>>, %arg2: memref<8x128xf32, #tpu.memory_space<vmem>>, %arg3: memref<8x1xi32, #tpu.memory_space<vmem>>, %arg4: memref<32x1x128xf32, #tpu.memory_space<vmem>>, %arg5: memref<1x128xf32, #tpu.memory_space<vmem>>, %arg6: memref<32x1x128xf32, #tpu.memory_space<vmem>>, %arg7: memref<8x128xf32, #tpu.memory_space<vmem>>) attributes {dimension_semantics = [#tpu.dimension_semantics<arbitrary>], iteration_bounds = array<i64: 1>, scalar_prefetch = 1 : i64, scratch_operands = 1 : i64, tpu.core_type = #tpu.core_type<tc>, window_params = [{transform_indices = @transform_0, window_bounds = array<i64: 8, 128>}, {transform_indices = @transform_1, window_bounds = array<i64: 8, 1>}, {pipeline_mode = #tpu.pipeline_mode<synchronous>, transform_indices = @transform_2, window_bounds = array<i64: 32, 1, 128>}, {pipeline_mode = #tpu.pipeline_mode<synchronous>, transform_indices = @transform_3, window_bounds = array<i64: 1, 128>}, {pipeline_mode = #tpu.pipeline_mode<synchronous>, transform_indices = @transform_4, window_bounds = array<i64: 32, 1, 128>}]} {
    %c0_i32 = arith.constant 0 : i32
    %0 = arith.cmpi eq, %arg0, %c0_i32 : i32
    %1 = arith.extui %0 : i1 to i32
    %c0_i32_0 = arith.constant 0 : i32
    %2 = arith.cmpi ne, %1, %c0_i32_0 : i32
    scf.if %2 {
      %cst_95 = arith.constant 0.000000e+00 : f32
      %214 = vector.broadcast %cst_95 : f32 to vector<1x128xf32>
      %c0_96 = arith.constant 0 : index
      %c0_97 = arith.constant 0 : index
      %215 = vector.load %arg5[%c0_96, %c0_97] : memref<1x128xf32, #tpu.memory_space<vmem>>, vector<1x128xf32>
      tpu.vector_store %arg5[%c0_96, %c0_97], %214 {strides = array<i32>} : memref<1x128xf32, #tpu.memory_space<vmem>>, vector<1x128xf32>,
      %c0_98 = arith.constant 0 : index
      %c0_99 = arith.constant 0 : index
      %c0_100 = arith.constant 0 : index
      %216 = vector.load %arg4[%c0_98, %c0_99, %c0_100] : memref<32x1x128xf32, #tpu.memory_space<vmem>>, vector<32x1x128xf32>
      %c0_101 = arith.constant 0 : index
      %c0_102 = arith.constant 0 : index
      %c0_103 = arith.constant 0 : index
      %217 = vector.load %arg6[%c0_101, %c0_102, %c0_103] : memref<32x1x128xf32, #tpu.memory_space<vmem>>, vector<32x1x128xf32>
      tpu.vector_store %arg6[%c0_101, %c0_102, %c0_103], %216 {strides = array<i32>} : memref<32x1x128xf32, #tpu.memory_space<vmem>>, vector<32x1x128xf32>,
    } else {
    }
    %c8_i32 = arith.constant 8 : i32
    %3 = arith.muli %arg0, %c8_i32 : i32
    %4 = tpu.iota {dimensions = array<i32: 1>} : vector<8x128xi32>
    %c10_i32 = arith.constant 10 : i32
    %5 = vector.broadcast %c10_i32 : i32 to vector<8x128xi32>
    %6 = arith.cmpi slt, %4, %5 : vector<8x128xi32>
    %7 = tpu.iota {dimensions = array<i32: 0>} : vector<8x1xi32>
    %8 = vector.broadcast %3 : i32 to vector<8x1xi32>
    %9 = arith.addi %7, %8 : vector<8x1xi32>
    %c8_i32_1 = arith.constant 8 : i32
    %10 = vector.broadcast %c8_i32_1 : i32 to vector<8x1xi32>
    %11 = arith.cmpi slt, %9, %10 : vector<8x1xi32>
    %c0 = arith.constant 0 : index
    %c0_2 = arith.constant 0 : index
    %12 = vector.load %arg2[%c0, %c0_2] : memref<8x128xf32, #tpu.memory_space<vmem>>, vector<8x128xf32>
    %cst = arith.constant -1.000000e+30 : f32
    %13 = vector.broadcast %cst : f32 to vector<8x128xf32>
    %14 = arith.select %6, %12, %13 : vector<8x128xi1>, vector<8x128xf32>
    %cst_3 = arith.constant dense<0xFF800000> : vector<8xf32>
    %15 = vector.multi_reduction <maximumf>, %14, %cst_3 [1] : vector<8x128xf32> to vector<8xf32>
    %16 = vector.shape_cast %15 : vector<8xf32> to vector<8x1xf32>
    %17 = vector.broadcast %16 : vector<8x1xf32> to vector<8x128xf32>
    %18 = arith.subf %14, %17 : vector<8x128xf32>
    %19 = math.exp %18 : vector<8x128xf32>
    %cst_4 = arith.constant dense<0.000000e+00> : vector<8xf32>
    %20 = vector.multi_reduction <add>, %19, %cst_4 [1] : vector<8x128xf32> to vector<8xf32>
    %21 = vector.shape_cast %20 : vector<8xf32> to vector<8x1xf32>
    %22 = vector.broadcast %21 : vector<8x1xf32> to vector<8x128xf32>
    %23 = arith.divf %19, %22 : vector<8x128xf32>
    %cst_5 = arith.constant 9.99999974E-5 : f32
    %cst_6 = arith.constant 0.999899983 : f32
    %24 = vector.broadcast %cst_5 : f32 to vector<8x128xf32>
    %25 = arith.maximumf %24, %23 : vector<8x128xf32>
    %26 = vector.broadcast %cst_6 : f32 to vector<8x128xf32>
    %27 = arith.minimumf %26, %25 : vector<8x128xf32>
    %cst_7 = arith.constant 0.000000e+00 : f32
    %28 = vector.broadcast %cst_7 : f32 to vector<8x128xf32>
    %29 = arith.select %6, %27, %28 : vector<8x128xi1>, vector<8x128xf32>
    %cst_8 = arith.constant dense<0.000000e+00> : vector<8xf32>
    %30 = vector.multi_reduction <add>, %29, %cst_8 [1] : vector<8x128xf32> to vector<8xf32>
    %31 = vector.shape_cast %30 : vector<8xf32> to vector<8x1xf32>
    %32 = vector.broadcast %31 : vector<8x1xf32> to vector<8x128xf32>
    %33 = arith.divf %29, %32 : vector<8x128xf32>
    %c0_9 = arith.constant 0 : index
    %c0_10 = arith.constant 0 : index
    %34 = vector.load %arg3[%c0_9, %c0_10] : memref<8x1xi32, #tpu.memory_space<vmem>>, vector<8x1xi32>
    %35 = vector.broadcast %34 : vector<8x1xi32> to vector<8x128xi32>
    %36 = arith.cmpi eq, %4, %35 : vector<8x128xi32>
    %cst_11 = arith.constant 0.000000e+00 : f32
    %37 = vector.broadcast %cst_11 : f32 to vector<8x128xf32>
    %38 = arith.select %36, %14, %37 : vector<8x128xi1>, vector<8x128xf32>
    %cst_12 = arith.constant dense<0.000000e+00> : vector<8xf32>
    %39 = vector.multi_reduction <add>, %38, %cst_12 [1] : vector<8x128xf32> to vector<8xf32>
    %40 = vector.shape_cast %39 : vector<8xf32> to vector<8x1xf32>
    %41 = math.log %21 : vector<8x1xf32>
    %42 = arith.addf %16, %41 : vector<8x1xf32>
    %43 = arith.subf %42, %40 : vector<8x1xf32>
    %c0_i32_13 = arith.constant 0 : i32
    %44 = arith.addi %3, %c0_i32_13 : i32
    %45 = arith.index_cast %44 : i32 to index
    %46 = memref.load %arg1[%45] : memref<8xi32, #tpu.memory_space<smem>>
    %47 = arith.index_cast %46 : i32 to index
    %c0_14 = arith.constant 0 : index
    %c0_15 = arith.constant 0 : index
    %48 = vector.load %arg4[%47, %c0_14, %c0_15] : memref<32x1x128xf32, #tpu.memory_space<vmem>>, vector<1x1x128xf32>
    %49 = vector.shape_cast %48 : vector<1x1x128xf32> to vector<1x128xf32>
    %cst_16 = arith.constant 0.699999988 : f32
    %50 = vector.broadcast %cst_16 : f32 to vector<1x128xf32>
    %51 = arith.mulf %50, %49 : vector<1x128xf32>
    %52 = vector.extract_strided_slice %33 {offsets = [0, 0], sizes = [1, 128], strides = [1, 1]} : vector<8x128xf32> to vector<1x128xf32>
    %cst_17 = arith.constant 3.000000e-01 : f32
    %53 = vector.broadcast %cst_17 : f32 to vector<1x128xf32>
    %54 = arith.mulf %53, %52 : vector<1x128xf32>
    %55 = arith.addf %51, %54 : vector<1x128xf32>
    %c0_18 = arith.constant 0 : index
    %c0_19 = arith.constant 0 : index
    %56 = vector.load %arg7[%c0_18, %c0_19] : memref<8x128xf32, #tpu.memory_space<vmem>>, vector<1x128xf32>
    tpu.vector_store %arg7[%c0_18, %c0_19], %55 {strides = array<i32>} : memref<8x128xf32, #tpu.memory_space<vmem>>, vector<1x128xf32>,
    %c0_i32_20 = arith.constant 0 : i32
    %57 = arith.addi %3, %c0_i32_20 : i32
    %c8_i32_21 = arith.constant 8 : i32
    %58 = arith.cmpi slt, %57, %c8_i32_21 : i32
    %59 = arith.extui %58 : i1 to i32
    %c0_i32_22 = arith.constant 0 : i32
    %60 = arith.cmpi ne, %59, %c0_i32_22 : i32
    scf.if %60 {
      %214 = arith.index_cast %46 : i32 to index
      %c0_95 = arith.constant 0 : index
      %c0_96 = arith.constant 0 : index
      %215 = vector.load %arg6[%214, %c0_95, %c0_96] : memref<32x1x128xf32, #tpu.memory_space<vmem>>, vector<1x1x128xf32>
      %216 = vector.shape_cast %215 : vector<1x1x128xf32> to vector<1x128xf32>
      %217 = vector.shape_cast %55 : vector<1x128xf32> to vector<1x1x128xf32>
      tpu.vector_store %arg6[%214, %c0_95, %c0_96], %217 {strides = array<i32>} : memref<32x1x128xf32, #tpu.memory_space<vmem>>, vector<1x1x128xf32>,
    } else {
    }
    %c1_i32 = arith.constant 1 : i32
    %61 = arith.addi %3, %c1_i32 : i32
    %62 = arith.index_cast %61 : i32 to index
    %63 = memref.load %arg1[%62] : memref<8xi32, #tpu.memory_space<smem>>
    %64 = arith.index_cast %63 : i32 to index
    %c0_23 = arith.constant 0 : index
    %c0_24 = arith.constant 0 : index
    %65 = vector.load %arg4[%64, %c0_23, %c0_24] : memref<32x1x128xf32, #tpu.memory_space<vmem>>, vector<1x1x128xf32>
    %66 = vector.shape_cast %65 : vector<1x1x128xf32> to vector<1x128xf32>
    %cst_25 = arith.constant 0.699999988 : f32
    %67 = vector.broadcast %cst_25 : f32 to vector<1x128xf32>
    %68 = arith.mulf %67, %66 : vector<1x128xf32>
    %69 = vector.extract_strided_slice %33 {offsets = [1, 0], sizes = [1, 128], strides = [1, 1]} : vector<8x128xf32> to vector<1x128xf32>
    %cst_26 = arith.constant 3.000000e-01 : f32
    %70 = vector.broadcast %cst_26 : f32 to vector<1x128xf32>
    %71 = arith.mulf %70, %69 : vector<1x128xf32>
    %72 = arith.addf %68, %71 : vector<1x128xf32>
    %c1 = arith.constant 1 : index
    %c0_27 = arith.constant 0 : index
    %73 = vector.load %arg7[%c1, %c0_27] : memref<8x128xf32, #tpu.memory_space<vmem>>, vector<1x128xf32>
    tpu.vector_store %arg7[%c1, %c0_27], %72 {strides = array<i32>} : memref<8x128xf32, #tpu.memory_space<vmem>>, vector<1x128xf32>,
    %c1_i32_28 = arith.constant 1 : i32
    %74 = arith.addi %3, %c1_i32_28 : i32
    %c8_i32_29 = arith.constant 8 : i32
    %75 = arith.cmpi slt, %74, %c8_i32_29 : i32
    %76 = arith.extui %75 : i1 to i32
    %c0_i32_30 = arith.constant 0 : i32
    %77 = arith.cmpi ne, %76, %c0_i32_30 : i32
    scf.if %77 {
      %214 = arith.index_cast %63 : i32 to index
      %c0_95 = arith.constant 0 : index
      %c0_96 = arith.constant 0 : index
      %215 = vector.load %arg6[%214, %c0_95, %c0_96] : memref<32x1x128xf32, #tpu.memory_space<vmem>>, vector<1x1x128xf32>
      %216 = vector.shape_cast %215 : vector<1x1x128xf32> to vector<1x128xf32>
      %217 = vector.shape_cast %72 : vector<1x128xf32> to vector<1x1x128xf32>
      tpu.vector_store %arg6[%214, %c0_95, %c0_96], %217 {strides = array<i32>} : memref<32x1x128xf32, #tpu.memory_space<vmem>>, vector<1x1x128xf32>,
    } else {
    }
    %c2_i32 = arith.constant 2 : i32
    %78 = arith.addi %3, %c2_i32 : i32
    %79 = arith.index_cast %78 : i32 to index
    %80 = memref.load %arg1[%79] : memref<8xi32, #tpu.memory_space<smem>>
    %81 = arith.index_cast %80 : i32 to index
    %c0_31 = arith.constant 0 : index
    %c0_32 = arith.constant 0 : index
    %82 = vector.load %arg4[%81, %c0_31, %c0_32] : memref<32x1x128xf32, #tpu.memory_space<vmem>>, vector<1x1x128xf32>
    %83 = vector.shape_cast %82 : vector<1x1x128xf32> to vector<1x128xf32>
    %cst_33 = arith.constant 0.699999988 : f32
    %84 = vector.broadcast %cst_33 : f32 to vector<1x128xf32>
    %85 = arith.mulf %84, %83 : vector<1x128xf32>
    %86 = vector.extract_strided_slice %33 {offsets = [2, 0], sizes = [1, 128], strides = [1, 1]} : vector<8x128xf32> to vector<1x128xf32>
    %cst_34 = arith.constant 3.000000e-01 : f32
    %87 = vector.broadcast %cst_34 : f32 to vector<1x128xf32>
    %88 = arith.mulf %87, %86 : vector<1x128xf32>
    %89 = arith.addf %85, %88 : vector<1x128xf32>
    %c2 = arith.constant 2 : index
    %c0_35 = arith.constant 0 : index
    %90 = vector.load %arg7[%c2, %c0_35] : memref<8x128xf32, #tpu.memory_space<vmem>>, vector<1x128xf32>
    tpu.vector_store %arg7[%c2, %c0_35], %89 {strides = array<i32>} : memref<8x128xf32, #tpu.memory_space<vmem>>, vector<1x128xf32>,
    %c2_i32_36 = arith.constant 2 : i32
    %91 = arith.addi %3, %c2_i32_36 : i32
    %c8_i32_37 = arith.constant 8 : i32
    %92 = arith.cmpi slt, %91, %c8_i32_37 : i32
    %93 = arith.extui %92 : i1 to i32
    %c0_i32_38 = arith.constant 0 : i32
    %94 = arith.cmpi ne, %93, %c0_i32_38 : i32
    scf.if %94 {
      %214 = arith.index_cast %80 : i32 to index
      %c0_95 = arith.constant 0 : index
      %c0_96 = arith.constant 0 : index
      %215 = vector.load %arg6[%214, %c0_95, %c0_96] : memref<32x1x128xf32, #tpu.memory_space<vmem>>, vector<1x1x128xf32>
      %216 = vector.shape_cast %215 : vector<1x1x128xf32> to vector<1x128xf32>
      %217 = vector.shape_cast %89 : vector<1x128xf32> to vector<1x1x128xf32>
      tpu.vector_store %arg6[%214, %c0_95, %c0_96], %217 {strides = array<i32>} : memref<32x1x128xf32, #tpu.memory_space<vmem>>, vector<1x1x128xf32>,
    } else {
    }
    %c3_i32 = arith.constant 3 : i32
    %95 = arith.addi %3, %c3_i32 : i32
    %96 = arith.index_cast %95 : i32 to index
    %97 = memref.load %arg1[%96] : memref<8xi32, #tpu.memory_space<smem>>
    %98 = arith.index_cast %97 : i32 to index
    %c0_39 = arith.constant 0 : index
    %c0_40 = arith.constant 0 : index
    %99 = vector.load %arg4[%98, %c0_39, %c0_40] : memref<32x1x128xf32, #tpu.memory_space<vmem>>, vector<1x1x128xf32>
    %100 = vector.shape_cast %99 : vector<1x1x128xf32> to vector<1x128xf32>
    %cst_41 = arith.constant 0.699999988 : f32
    %101 = vector.broadcast %cst_41 : f32 to vector<1x128xf32>
    %102 = arith.mulf %101, %100 : vector<1x128xf32>
    %103 = vector.extract_strided_slice %33 {offsets = [3, 0], sizes = [1, 128], strides = [1, 1]} : vector<8x128xf32> to vector<1x128xf32>
    %cst_42 = arith.constant 3.000000e-01 : f32
    %104 = vector.broadcast %cst_42 : f32 to vector<1x128xf32>
    %105 = arith.mulf %104, %103 : vector<1x128xf32>
    %106 = arith.addf %102, %105 : vector<1x128xf32>
    %c3 = arith.constant 3 : index
    %c0_43 = arith.constant 0 : index
    %107 = vector.load %arg7[%c3, %c0_43] : memref<8x128xf32, #tpu.memory_space<vmem>>, vector<1x128xf32>
    tpu.vector_store %arg7[%c3, %c0_43], %106 {strides = array<i32>} : memref<8x128xf32, #tpu.memory_space<vmem>>, vector<1x128xf32>,
    %c3_i32_44 = arith.constant 3 : i32
    %108 = arith.addi %3, %c3_i32_44 : i32
    %c8_i32_45 = arith.constant 8 : i32
    %109 = arith.cmpi slt, %108, %c8_i32_45 : i32
    %110 = arith.extui %109 : i1 to i32
    %c0_i32_46 = arith.constant 0 : i32
    %111 = arith.cmpi ne, %110, %c0_i32_46 : i32
    scf.if %111 {
      %214 = arith.index_cast %97 : i32 to index
      %c0_95 = arith.constant 0 : index
      %c0_96 = arith.constant 0 : index
      %215 = vector.load %arg6[%214, %c0_95, %c0_96] : memref<32x1x128xf32, #tpu.memory_space<vmem>>, vector<1x1x128xf32>
      %216 = vector.shape_cast %215 : vector<1x1x128xf32> to vector<1x128xf32>
      %217 = vector.shape_cast %106 : vector<1x128xf32> to vector<1x1x128xf32>
      tpu.vector_store %arg6[%214, %c0_95, %c0_96], %217 {strides = array<i32>} : memref<32x1x128xf32, #tpu.memory_space<vmem>>, vector<1x1x128xf32>,
    } else {
    }
    %c4_i32 = arith.constant 4 : i32
    %112 = arith.addi %3, %c4_i32 : i32
    %113 = arith.index_cast %112 : i32 to index
    %114 = memref.load %arg1[%113] : memref<8xi32, #tpu.memory_space<smem>>
    %115 = arith.index_cast %114 : i32 to index
    %c0_47 = arith.constant 0 : index
    %c0_48 = arith.constant 0 : index
    %116 = vector.load %arg4[%115, %c0_47, %c0_48] : memref<32x1x128xf32, #tpu.memory_space<vmem>>, vector<1x1x128xf32>
    %117 = vector.shape_cast %116 : vector<1x1x128xf32> to vector<1x128xf32>
    %cst_49 = arith.constant 0.699999988 : f32
    %118 = vector.broadcast %cst_49 : f32 to vector<1x128xf32>
    %119 = arith.mulf %118, %117 : vector<1x128xf32>
    %120 = vector.extract_strided_slice %33 {offsets = [4, 0], sizes = [1, 128], strides = [1, 1]} : vector<8x128xf32> to vector<1x128xf32>
    %cst_50 = arith.constant 3.000000e-01 : f32
    %121 = vector.broadcast %cst_50 : f32 to vector<1x128xf32>
    %122 = arith.mulf %121, %120 : vector<1x128xf32>
    %123 = arith.addf %119, %122 : vector<1x128xf32>
    %c4 = arith.constant 4 : index
    %c0_51 = arith.constant 0 : index
    %124 = vector.load %arg7[%c4, %c0_51] : memref<8x128xf32, #tpu.memory_space<vmem>>, vector<1x128xf32>
    tpu.vector_store %arg7[%c4, %c0_51], %123 {strides = array<i32>} : memref<8x128xf32, #tpu.memory_space<vmem>>, vector<1x128xf32>,
    %c4_i32_52 = arith.constant 4 : i32
    %125 = arith.addi %3, %c4_i32_52 : i32
    %c8_i32_53 = arith.constant 8 : i32
    %126 = arith.cmpi slt, %125, %c8_i32_53 : i32
    %127 = arith.extui %126 : i1 to i32
    %c0_i32_54 = arith.constant 0 : i32
    %128 = arith.cmpi ne, %127, %c0_i32_54 : i32
    scf.if %128 {
      %214 = arith.index_cast %114 : i32 to index
      %c0_95 = arith.constant 0 : index
      %c0_96 = arith.constant 0 : index
      %215 = vector.load %arg6[%214, %c0_95, %c0_96] : memref<32x1x128xf32, #tpu.memory_space<vmem>>, vector<1x1x128xf32>
      %216 = vector.shape_cast %215 : vector<1x1x128xf32> to vector<1x128xf32>
      %217 = vector.shape_cast %123 : vector<1x128xf32> to vector<1x1x128xf32>
      tpu.vector_store %arg6[%214, %c0_95, %c0_96], %217 {strides = array<i32>} : memref<32x1x128xf32, #tpu.memory_space<vmem>>, vector<1x1x128xf32>,
    } else {
    }
    %c5_i32 = arith.constant 5 : i32
    %129 = arith.addi %3, %c5_i32 : i32
    %130 = arith.index_cast %129 : i32 to index
    %131 = memref.load %arg1[%130] : memref<8xi32, #tpu.memory_space<smem>>
    %132 = arith.index_cast %131 : i32 to index
    %c0_55 = arith.constant 0 : index
    %c0_56 = arith.constant 0 : index
    %133 = vector.load %arg4[%132, %c0_55, %c0_56] : memref<32x1x128xf32, #tpu.memory_space<vmem>>, vector<1x1x128xf32>
    %134 = vector.shape_cast %133 : vector<1x1x128xf32> to vector<1x128xf32>
    %cst_57 = arith.constant 0.699999988 : f32
    %135 = vector.broadcast %cst_57 : f32 to vector<1x128xf32>
    %136 = arith.mulf %135, %134 : vector<1x128xf32>
    %137 = vector.extract_strided_slice %33 {offsets = [5, 0], sizes = [1, 128], strides = [1, 1]} : vector<8x128xf32> to vector<1x128xf32>
    %cst_58 = arith.constant 3.000000e-01 : f32
    %138 = vector.broadcast %cst_58 : f32 to vector<1x128xf32>
    %139 = arith.mulf %138, %137 : vector<1x128xf32>
    %140 = arith.addf %136, %139 : vector<1x128xf32>
    %c5 = arith.constant 5 : index
    %c0_59 = arith.constant 0 : index
    %141 = vector.load %arg7[%c5, %c0_59] : memref<8x128xf32, #tpu.memory_space<vmem>>, vector<1x128xf32>
    tpu.vector_store %arg7[%c5, %c0_59], %140 {strides = array<i32>} : memref<8x128xf32, #tpu.memory_space<vmem>>, vector<1x128xf32>,
    %c5_i32_60 = arith.constant 5 : i32
    %142 = arith.addi %3, %c5_i32_60 : i32
    %c8_i32_61 = arith.constant 8 : i32
    %143 = arith.cmpi slt, %142, %c8_i32_61 : i32
    %144 = arith.extui %143 : i1 to i32
    %c0_i32_62 = arith.constant 0 : i32
    %145 = arith.cmpi ne, %144, %c0_i32_62 : i32
    scf.if %145 {
      %214 = arith.index_cast %131 : i32 to index
      %c0_95 = arith.constant 0 : index
      %c0_96 = arith.constant 0 : index
      %215 = vector.load %arg6[%214, %c0_95, %c0_96] : memref<32x1x128xf32, #tpu.memory_space<vmem>>, vector<1x1x128xf32>
      %216 = vector.shape_cast %215 : vector<1x1x128xf32> to vector<1x128xf32>
      %217 = vector.shape_cast %140 : vector<1x128xf32> to vector<1x1x128xf32>
      tpu.vector_store %arg6[%214, %c0_95, %c0_96], %217 {strides = array<i32>} : memref<32x1x128xf32, #tpu.memory_space<vmem>>, vector<1x1x128xf32>,
    } else {
    }
    %c6_i32 = arith.constant 6 : i32
    %146 = arith.addi %3, %c6_i32 : i32
    %147 = arith.index_cast %146 : i32 to index
    %148 = memref.load %arg1[%147] : memref<8xi32, #tpu.memory_space<smem>>
    %149 = arith.index_cast %148 : i32 to index
    %c0_63 = arith.constant 0 : index
    %c0_64 = arith.constant 0 : index
    %150 = vector.load %arg4[%149, %c0_63, %c0_64] : memref<32x1x128xf32, #tpu.memory_space<vmem>>, vector<1x1x128xf32>
    %151 = vector.shape_cast %150 : vector<1x1x128xf32> to vector<1x128xf32>
    %cst_65 = arith.constant 0.699999988 : f32
    %152 = vector.broadcast %cst_65 : f32 to vector<1x128xf32>
    %153 = arith.mulf %152, %151 : vector<1x128xf32>
    %154 = vector.extract_strided_slice %33 {offsets = [6, 0], sizes = [1, 128], strides = [1, 1]} : vector<8x128xf32> to vector<1x128xf32>
    %cst_66 = arith.constant 3.000000e-01 : f32
    %155 = vector.broadcast %cst_66 : f32 to vector<1x128xf32>
    %156 = arith.mulf %155, %154 : vector<1x128xf32>
    %157 = arith.addf %153, %156 : vector<1x128xf32>
    %c6 = arith.constant 6 : index
    %c0_67 = arith.constant 0 : index
    %158 = vector.load %arg7[%c6, %c0_67] : memref<8x128xf32, #tpu.memory_space<vmem>>, vector<1x128xf32>
    tpu.vector_store %arg7[%c6, %c0_67], %157 {strides = array<i32>} : memref<8x128xf32, #tpu.memory_space<vmem>>, vector<1x128xf32>,
    %c6_i32_68 = arith.constant 6 : i32
    %159 = arith.addi %3, %c6_i32_68 : i32
    %c8_i32_69 = arith.constant 8 : i32
    %160 = arith.cmpi slt, %159, %c8_i32_69 : i32
    %161 = arith.extui %160 : i1 to i32
    %c0_i32_70 = arith.constant 0 : i32
    %162 = arith.cmpi ne, %161, %c0_i32_70 : i32
    scf.if %162 {
      %214 = arith.index_cast %148 : i32 to index
      %c0_95 = arith.constant 0 : index
      %c0_96 = arith.constant 0 : index
      %215 = vector.load %arg6[%214, %c0_95, %c0_96] : memref<32x1x128xf32, #tpu.memory_space<vmem>>, vector<1x1x128xf32>
      %216 = vector.shape_cast %215 : vector<1x1x128xf32> to vector<1x128xf32>
      %217 = vector.shape_cast %157 : vector<1x128xf32> to vector<1x1x128xf32>
      tpu.vector_store %arg6[%214, %c0_95, %c0_96], %217 {strides = array<i32>} : memref<32x1x128xf32, #tpu.memory_space<vmem>>, vector<1x1x128xf32>,
    } else {
    }
    %c7_i32 = arith.constant 7 : i32
    %163 = arith.addi %3, %c7_i32 : i32
    %164 = arith.index_cast %163 : i32 to index
    %165 = memref.load %arg1[%164] : memref<8xi32, #tpu.memory_space<smem>>
    %166 = arith.index_cast %165 : i32 to index
    %c0_71 = arith.constant 0 : index
    %c0_72 = arith.constant 0 : index
    %167 = vector.load %arg4[%166, %c0_71, %c0_72] : memref<32x1x128xf32, #tpu.memory_space<vmem>>, vector<1x1x128xf32>
    %168 = vector.shape_cast %167 : vector<1x1x128xf32> to vector<1x128xf32>
    %cst_73 = arith.constant 0.699999988 : f32
    %169 = vector.broadcast %cst_73 : f32 to vector<1x128xf32>
    %170 = arith.mulf %169, %168 : vector<1x128xf32>
    %171 = vector.extract_strided_slice %33 {offsets = [7, 0], sizes = [1, 128], strides = [1, 1]} : vector<8x128xf32> to vector<1x128xf32>
    %cst_74 = arith.constant 3.000000e-01 : f32
    %172 = vector.broadcast %cst_74 : f32 to vector<1x128xf32>
    %173 = arith.mulf %172, %171 : vector<1x128xf32>
    %174 = arith.addf %170, %173 : vector<1x128xf32>
    %c7 = arith.constant 7 : index
    %c0_75 = arith.constant 0 : index
    %175 = vector.load %arg7[%c7, %c0_75] : memref<8x128xf32, #tpu.memory_space<vmem>>, vector<1x128xf32>
    tpu.vector_store %arg7[%c7, %c0_75], %174 {strides = array<i32>} : memref<8x128xf32, #tpu.memory_space<vmem>>, vector<1x128xf32>,
    %c7_i32_76 = arith.constant 7 : i32
    %176 = arith.addi %3, %c7_i32_76 : i32
    %c8_i32_77 = arith.constant 8 : i32
    %177 = arith.cmpi slt, %176, %c8_i32_77 : i32
    %178 = arith.extui %177 : i1 to i32
    %c0_i32_78 = arith.constant 0 : i32
    %179 = arith.cmpi ne, %178, %c0_i32_78 : i32
    scf.if %179 {
      %214 = arith.index_cast %165 : i32 to index
      %c0_95 = arith.constant 0 : index
      %c0_96 = arith.constant 0 : index
      %215 = vector.load %arg6[%214, %c0_95, %c0_96] : memref<32x1x128xf32, #tpu.memory_space<vmem>>, vector<1x1x128xf32>
      %216 = vector.shape_cast %215 : vector<1x1x128xf32> to vector<1x128xf32>
      %217 = vector.shape_cast %174 : vector<1x128xf32> to vector<1x1x128xf32>
      tpu.vector_store %arg6[%214, %c0_95, %c0_96], %217 {strides = array<i32>} : memref<32x1x128xf32, #tpu.memory_space<vmem>>, vector<1x1x128xf32>,
    } else {
    }
    %c0_79 = arith.constant 0 : index
    %c0_80 = arith.constant 0 : index
    %180 = vector.load %arg7[%c0_79, %c0_80] : memref<8x128xf32, #tpu.memory_space<vmem>>, vector<8x128xf32>
    %181 = arith.mulf %180, %29 : vector<8x128xf32>
    %cst_81 = arith.constant dense<0.000000e+00> : vector<8xf32>
    %182 = vector.multi_reduction <add>, %181, %cst_81 [1] : vector<8x128xf32> to vector<8xf32>
    %183 = vector.shape_cast %182 : vector<8xf32> to vector<8x1xf32>
    %cst_82 = arith.constant 0.000000e+00 : f32
    %184 = vector.broadcast %cst_82 : f32 to vector<8x1xf32>
    %185 = arith.select %11, %183, %184 : vector<8x1xi1>, vector<8x1xf32>
    %cst_83 = arith.constant 1.000000e+00 : f32
    %186 = vector.broadcast %cst_83 : f32 to vector<8x1xf32>
    %187 = arith.subf %186, %185 : vector<8x1xf32>
    %188 = math.log %187 : vector<8x1xf32>
    %cst_84 = arith.constant 0.000000e+00 : f32
    %189 = vector.broadcast %cst_84 : f32 to vector<8x1xf32>
    %190 = arith.select %11, %43, %189 : vector<8x1xi1>, vector<8x1xf32>
    %191 = vector.shape_cast %190 : vector<8x1xf32> to vector<1x8x1xf32>
    %cst_85 = arith.constant dense<0.000000e+00> : vector<1xf32>
    %192 = vector.multi_reduction <add>, %191, %cst_85 [1, 2] : vector<1x8x1xf32> to vector<1xf32>
    %193 = vector.shape_cast %192 : vector<1xf32> to vector<1x1x1xf32>
    %194 = vector.extract %193[0, 0, 0] : f32 from vector<1x1x1xf32>
    %195 = vector.shape_cast %188 : vector<8x1xf32> to vector<1x8x1xf32>
    %cst_86 = arith.constant dense<0.000000e+00> : vector<1xf32>
    %196 = vector.multi_reduction <add>, %195, %cst_86 [1, 2] : vector<1x8x1xf32> to vector<1xf32>
    %197 = vector.shape_cast %196 : vector<1xf32> to vector<1x1x1xf32>
    %198 = vector.extract %197[0, 0, 0] : f32 from vector<1x1x1xf32>
    %199 = tpu.iota {dimensions = array<i32: 1>} : vector<1x128xi32>
    %c0_87 = arith.constant 0 : index
    %c0_88 = arith.constant 0 : index
    %200 = vector.load %arg5[%c0_87, %c0_88] : memref<1x128xf32, #tpu.memory_space<vmem>>, vector<1x128xf32>
    %c0_i32_89 = arith.constant 0 : i32
    %201 = vector.broadcast %c0_i32_89 : i32 to vector<1x128xi32>
    %202 = arith.cmpi eq, %199, %201 : vector<1x128xi32>
    %cst_90 = arith.constant 0.000000e+00 : f32
    %203 = vector.broadcast %194 : f32 to vector<1x128xf32>
    %204 = vector.broadcast %cst_90 : f32 to vector<1x128xf32>
    %205 = arith.select %202, %203, %204 : vector<1x128xi1>, vector<1x128xf32>
    %c1_i32_91 = arith.constant 1 : i32
    %206 = vector.broadcast %c1_i32_91 : i32 to vector<1x128xi32>
    %207 = arith.cmpi eq, %199, %206 : vector<1x128xi32>
    %cst_92 = arith.constant 0.000000e+00 : f32
    %208 = vector.broadcast %198 : f32 to vector<1x128xf32>
    %209 = vector.broadcast %cst_92 : f32 to vector<1x128xf32>
    %210 = arith.select %207, %208, %209 : vector<1x128xi1>, vector<1x128xf32>
    %211 = arith.addf %205, %210 : vector<1x128xf32>
    %212 = arith.addf %200, %211 : vector<1x128xf32>
    %c0_93 = arith.constant 0 : index
    %c0_94 = arith.constant 0 : index
    %213 = vector.load %arg5[%c0_93, %c0_94] : memref<1x128xf32, #tpu.memory_space<vmem>>, vector<1x128xf32>
    tpu.vector_store %arg5[%c0_93, %c0_94], %212 {strides = array<i32>} : memref<1x128xf32, #tpu.memory_space<vmem>>, vector<1x128xf32>,
    return
  }
  func.func @transform_0(%arg0: i32, %arg1: memref<8xi32, #tpu.memory_space<smem>>) -> (i32, i32) {
    %c0_i32 = arith.constant 0 : i32
    %c0_i32_0 = arith.constant 0 : i32
    return %arg0, %c0_i32 : i32, i32
  }
  func.func @transform_1(%arg0: i32, %arg1: memref<8xi32, #tpu.memory_space<smem>>) -> (i32, i32) {
    %c0_i32 = arith.constant 0 : i32
    %c0_i32_0 = arith.constant 0 : i32
    return %arg0, %c0_i32 : i32, i32
  }
  func.func @transform_2(%arg0: i32, %arg1: memref<8xi32, #tpu.memory_space<smem>>) -> (i32, i32, i32) {
    %c0_i32 = arith.constant 0 : i32
    %c0_i32_0 = arith.constant 0 : i32
    %c0_i32_1 = arith.constant 0 : i32
    %c0_i32_2 = arith.constant 0 : i32
    return %c0_i32, %c0_i32_0, %c0_i32_1 : i32, i32, i32
  }
  func.func @transform_3(%arg0: i32, %arg1: memref<8xi32, #tpu.memory_space<smem>>) -> (i32, i32) {
    %c0_i32 = arith.constant 0 : i32
    %c0_i32_0 = arith.constant 0 : i32
    %c0_i32_1 = arith.constant 0 : i32
    return %c0_i32, %c0_i32_0 : i32, i32
  }
  func.func @transform_4(%arg0: i32, %arg1: memref<8xi32, #tpu.memory_space<smem>>) -> (i32, i32, i32) {
    %c0_i32 = arith.constant 0 : i32
    %c0_i32_0 = arith.constant 0 : i32
    %c0_i32_1 = arith.constant 0 : i32
    %c0_i32_2 = arith.constant 0 : i32
    return %c0_i32, %c0_i32_0, %c0_i32_1 : i32, i32, i32
  }
}

</mosaic_0001>

<bundles_post_ra>
// kernel: tpu_custom_call.1
= control target key start
LH: loop header
LB: loop body
LE: loop exit
PB: predicated region body
PF: predicated region fallthrough
CT: control target
= control target key end

     0   :  { %s630_s0 = inlined_call_operand.vmem [shape: s32[8], index: 0, kind: input, shape index: {}]   ;;  %s631_s1 = inlined_call_operand.vmem [shape: f32[8,128], index: 1, kind: input, shape index: {}]   ;;  %s632_s2 = inlined_call_operand.vmem [shape: s32[8,1], index: 2, kind: input, shape index: {}]   ;;  %s633_s3 = inlined_call_operand.hbm [shape: f32[32,1,128], index: 3, kind: input, shape index: {}]   ;;  %s634_s4 = inlined_call_operand.hbm [shape: f32[1,128], index: 4, kind: output, shape index: {0}]   ;;  %s635_s5 = inlined_call_operand.hbm [shape: f32[32,1,128], index: 5, kind: output, shape index: {1}]  }
   0x1   :  { %s11_s20 = sshll.u32 %s630_s0, 4  ;;  %s12_s20 = int_to_ptr.vmem [resolvable:$true] %s11_s20 }
   0x2   :  { %s427_s21 = scalar_lea.vmem %s12_s20, 16  ;;  %p432_p1 = scmp.lt.s32.totalorder %s12_s20, %s12_s20 }
   0x3   :  { %p428_p0 = scmp.ne.s32.totalorder %s12_s20, %s427_s21  ;;  %p433_p2 = scmp.lt.s32.totalorder %s427_s21, %s427_s21 }
   0x5   :  { %p434_p3 = por %p433_p2, %p432_p1 }
   0x7   :  { %p435_p4 = pnand %p434_p3, %p428_p0 }
   0x9   :  { %438 = shalt.err (!%p435_p4)  }
   0xa   :  { %s507_s22 = smov [#allocation4]  }
   0xb   :  { %14 = dma.vmem_to_smem %s12_s20, 16, %s507_s22, [#allocation3] }
   0xc   :  { %499 = dma.done.wait [#allocation3], 16 }
   0xd   :  { %500 = vsyncadd [#allocation3], 4294967280 }
   0xe   :  { %16 = sfence }
   0xf   :  { %17 = vsyncpa [#allocation6], 0 }
  0x10   :  { %18 = vsyncpa [#allocation7], 0 }
  0x11   :  { %19 = vsyncpa [#allocation10], 0  ;;  %s508_s23 = smov [#allocation5]  }
  0x12   :  { %s29_s24 = sshll.u32 %s508_s23, 4  ;;  %s30_s24 = int_to_ptr.vmem [resolvable:$true] %s29_s24 }
  0x13   :  { %s447_s0 = scalar_lea.vmem %s30_s24, 512  ;;  %p452_p6 = scmp.lt.s32.totalorder %s30_s24, %s30_s24 }
  0x14   :  { %p448_p5 = scmp.ne.s32.totalorder %s30_s24, %s447_s0  ;;  %p453_p7 = scmp.lt.s32.totalorder %s447_s0, %s447_s0 }
  0x16   :  { %p454_p8 = por %p453_p7, %p452_p6 }
  0x18   :  { %p455_p9 = pnand %p454_p8, %p448_p5 }
  0x1a   :  { %458 = shalt.err (!%p455_p9)
}
  0x1b   :  { %s509_s25 = smov 16   ;;  %s510_s26 = smov 1  }
  0x1c   :  { %35 = dma.hbm_to_vmem [thread:$0]  %s633_s3, 512, %s30_s24, [#allocation6], %s509_s25, %s509_s25, %s510_s26  }
  0x1d   :  { %501 = dma.done.wait [#allocation6], 512  }
  0x1e   :  { %502 = vsyncadd [#allocation6], 4294966784  ;;  %v109_v0 = vlaneseq  ;;  %v117_v2 = vld [vmem:[%s631_s1] sm:$0xff]  ;;  %v511_v8 = vmov 0   ;;  %v44_v15 = vld [vmem:[#allocation5] sm:$0xff]   ;;  %s581_s6 = sld [smem:[#allocation4]] }
  0x1f   :  { %415 = vset.pattern.permute.xlu1 %v511_v8  ;;  %416 = vset.pattern.permute.xlu0 %v511_v8  ;;  %v52_v16 = vld [vmem:[#allocation5 + $0x8] sm:$0xff]   ;;  %v60_v17 = vld [vmem:[#allocation5 + $0x10] sm:$0xff]   ;;  %v68_v18 = vld [vmem:[#allocation5 + $0x18] sm:$0xff]   ;;  %76 = vst [vmem:[#allocation9] sm:$0xff] %v44_v15   ;;  %s583_s7 = sld [smem:[#allocation4 + $0x1]]  ;;  %vm317_vm2 = vcmask 7168  }
  0x20   :  { %v555_v1 = vand.u32 127, %v109_v0  ;;  %84 = vst [vmem:[#allocation9 + $0x8] sm:$0xff] %v52_v16   ;;  %92 = vst [vmem:[#allocation9 + $0x10] sm:$0xff] %v60_v17   ;;  %v135_v19 = vld [vmem:[%s632_s2] sm:$0xff]  ;;  %s585_s8 = sld [smem:[#allocation4 + $0x2]]  ;;  %v170_v24 = vshrl.u32 %v109_v0, 7 }
  0x21   :  { %100 = vst [vmem:[#allocation9 + $0x18] sm:$0xff] %v68_v18   ;;  %v512_v21 = vmov 1966171168   ;;  %s587_s9 = sld [smem:[#allocation4 + $0x4]]  ;;  %s514_s30 = smov [#allocation9]  }
  0x22   :  { %vm111_vm0 = vcmp.lt.s32.totalorder %v555_v1, 10  ;;  %v167_v22 = vunpack.c.l.s4 %v512_v21  ;;  %s589_s10 = sld [smem:[#allocation4 + $0x3]]  ;;  %s363_s1 = sshll.u32 %s514_s30, 4  ;;  %s364_s1 = int_to_ptr.vmem [resolvable:$true] %s363_s1 }
  0x23   :  { %v563_v3 = vsel %vm111_vm0, %v117_v2, -1e+30  ;;  %s591_s11 = sld [smem:[#allocation4 + $0x5]]  ;;  %s459_s3 = scalar_lea.vmem %s364_s1, 512 }
  0x24   :  { %119 = vmax.xlane.f32.xlu0 %v563_v3  ;;  %s593_s2 = sld [smem:[#allocation4 + $0x6]]  ;;  %v168_v23 = vunpack.c.0.s8 %v167_v22  ;;  %s148_s12 = scalar_lea.vmem [#allocation5], %s581_s6 }
  0x25   :  { %v149_v25 = vld [vmem:[%s148_s12] sm:$0x1]  ;;  %s596_s13 = sld [smem:[#allocation4 + $0x7]]  ;;  %s162_s14 = scalar_lea.vmem [#allocation5], %s583_s7 }
  0x26   :  { %v171_v27 = vsub.s32 %v168_v23, %v170_v24  ;;  %v150_v28 = vmul.f32 0.7, %v149_v25  ;;  %v163_v30 = vld [vmem:[%s162_s14] sm:$0x1]  ;;  %s199_s15 = scalar_lea.vmem [#allocation5], %s585_s8  ;;  %s158_s20 = scalar_lea.vmem [#allocation9], %s581_s6 }
  0x27   :  { %v200_v31 = vld [vmem:[%s199_s15] sm:$0x1]  ;;  %s229_s16 = scalar_lea.vmem [#allocation5], %s587_s9  ;;  %v164_v38 = vmul.f32 0.7, %v163_v30  ;;  %s195_s22 = scalar_lea.vmem [#allocation9], %s583_s7 }
  0x28   :  { %v230_v33 = vld [vmem:[%s229_s16] sm:$0x1]  ;;  %s214_s17 = scalar_lea.vmem [#allocation5], %s589_s10  ;;  %v201_v39 = vmul.f32 0.7, %v200_v31  ;;  %s210_s23 = scalar_lea.vmem [#allocation9], %s585_s8 }
  0x29   :  { %v215_v34 = vld [vmem:[%s214_s17] sm:$0x1]  ;;  %v231_v40 = vmul.f32 0.7, %v230_v33  ;;  %s258_s18 = scalar_lea.vmem [#allocation5], %s591_s11  ;;  %s225_s24 = scalar_lea.vmem [#allocation9], %s589_s10 }
  0x2a   :  { %v259_v41 = vld [vmem:[%s258_s18] sm:$0x1]  ;;  %s280_s19 = scalar_lea.vmem [#allocation5], %s593_s2  ;;  %v216_v46 = vmul.f32 0.7, %v215_v34  ;;  %s254_s0 = scalar_lea.vmem [#allocation9], %s587_s9 }
  0x2b   :  { %v281_v42 = vld [vmem:[%s280_s19] sm:$0x1]  ;;  %s295_s21 = scalar_lea.vmem [#allocation5], %s596_s13  ;;  %v260_v52 = vmul.f32 0.7, %v259_v41  ;;  %s276_s27 = scalar_lea.vmem [#allocation9], %s591_s11 }
  0x2c   :  { %v296_v47 = vld [vmem:[%s295_s21] sm:$0x1]  ;;  %v282_v53 = vmul.f32 0.7, %v281_v42  ;;  %s291_s28 = scalar_lea.vmem [#allocation9], %s593_s2  ;;  %s306_s29 = scalar_lea.vmem [#allocation9], %s596_s13 }
  0x2d   :  { %v297_v58 = vmul.f32 0.7, %v296_v47  ;;  %p460_p10 = scmp.ne.s32.totalorder %s364_s1, %s459_s3  ;;  %p464_p11 = scmp.lt.s32.totalorder %s364_s1, %s364_s1 }
  0x2e   :  { %p465_p12 = scmp.lt.s32.totalorder %s459_s3, %s459_s3 }
  0x30   :  { %p466_p13 = por %p465_p12, %p464_p11 }
  0x32   :  { %p467_p0 = pnand %p466_p13, %p460_p10 }
  0xad   :  { %v566_v4 = vpop.xlane.xlu0 %119 }
  0xae   :  { %v121_v5 = vsub.f32 %v563_v3, %v566_v4 }
  0xb0   :  { %v122_v6 = vmul.f32 1.442695, %v121_v5 }
  0xb2   :  { %417 = vpow2.f32 %v122_v6 }
  0xbf   :  { %v418_v7 = vpop.eup %417 }
  0xc0   :  { %124 = vadd.xlane.f32.xlu0 %v418_v7 }
 0x149   :  { %v570_v9 = vpop.xlane.xlu0 %124 }
 0x14a   :  { %419 = vrcp.f32 %v570_v9 }
 0x157   :  { %v420_v10 = vpop.eup %419 }
 0x158   :  { %v127_v11 = vmul.f32 %v420_v10, %v418_v7 }
 0x15a   :  { %v128_v12 = vmax.f32 %v127_v11, 0.0001 }
 0x15c   :  { %v129_v13 = vmin.f32 %v128_v12, 0.9999 }
 0x15e   :  { %v575_v14 = vsel %vm111_vm0, %v129_v13, 0.0 }
 0x15f   :  { %131 = vadd.xlane.f32.xlu1 %v575_v14 }
 0x170   :  { %137 = vperm.xlu1 %415, %v135_v19  }
 0x1e8   :  { %v132_v20 = vpop.xlane.xlu1 %131 }
 0x1e9   :  { %421 = vrcp.f32 %v132_v20 }
 0x1ea   :  { %423 = vlog2.f32 %v570_v9 }
 0x1ec   :  { %v138_v5 = vpop.permute.xlu1 %137 }
 0x1ed   :  { %vm139_vm1 = vcmp.eq.s32.totalorder %v555_v1, %v138_v5 }
 0x1ee   :  { %v140_v8 = vsel %vm139_vm1, %v563_v3, 0.0  ;;  %v513_v3 = vmov 0.0  }
 0x1ef   :  { %43 = vst [vmem:[#allocation8] sm:$0x1] %v513_v3 }
 0x1f6   :  { %v422_v26 = vpop.eup %421 }
 0x1f7   :  { %v134_v29 = vmul.f32 %v422_v26, %v575_v14  ;;  %v424_v10 = vpop.eup %423 }
 0x1f8   :  { %v144_v11 = vmul.f32 0.6931472, %v424_v10 }
 0x1f9   :  { %v151_v32 = vmul.f32 0.3, %v134_v29 }
 0x1fa   :  { %v145_v15 = vadd.f32 %v144_v11, %v566_v4 }
 0x1fb   :  { %v152_v35 = vadd.f32 %v151_v32, %v150_v28  ;;  %v172_v36 = vrot.slane %v151_v32, %v171_v27  ;;  %v232_v37 = vcombine.high %v151_v32, %v151_v32 }
 0x1fd   :  { %153 = vst [vmem:[#allocation2] sm:$0x1] %v152_v35  ;;  %159 = vst [vmem:[%s158_s20] sm:$0x1] %v152_v35  ;;  %v173_v43 = vcombine.high %v172_v36, %v172_v36  ;;  %v180_v44 = vrot.slane %v172_v36, %v171_v27  ;;  %v239_v45 = vrot.slane %v232_v37, %v171_v27 }
 0x1ff   :  { %v187_v48 = vrot.slane %v173_v43, %v171_v27  ;;  %v202_v49 = vcombine.high %v180_v44, %v180_v44  ;;  %v246_v50 = vrot.slane %v239_v45, %v171_v27  ;;  %v261_v51 = vcombine.high %v239_v45, %v239_v45 }
 0x201   :  { %v189_v54 = vadd.f32 %v187_v48, %v164_v38  ;;  %v204_v55 = vadd.f32 %v202_v49, %v201_v39  ;;  %v217_v56 = vcombine.high %v187_v48, %v187_v48  ;;  %v248_v57 = vadd.f32 %v246_v50, %v231_v40 }
 0x202   :  { %v268_v59 = vrot.slane %v261_v51, %v171_v27  ;;  %v283_v60 = vcombine.high %v246_v50, %v246_v50 }
 0x203   :  { %190 = vst [vmem:[#allocation2 + $0x1] sm:$0x1] %v189_v54  ;;  %196 = vst [vmem:[%s195_s22] sm:$0x1] %v189_v54  ;;  %v219_v61 = vadd.f32 %v217_v56, %v216_v46 }
 0x204   :  { %205 = vst [vmem:[#allocation2 + $0x2] sm:$0x1] %v204_v55  ;;  %249 = vst [vmem:[#allocation2 + $0x4] sm:$0x1] %v248_v57  ;;  %v270_v62 = vadd.f32 %v268_v59, %v260_v52  ;;  %v285_v63 = vadd.f32 %v283_v60, %v282_v53  ;;  %v298_v0 = vcombine.high %v268_v59, %v268_v59 }
 0x205   :  { %211 = vst [vmem:[%s210_s23] sm:$0x1] %v204_v55  ;;  %220 = vst [vmem:[#allocation2 + $0x3] sm:$0x1] %v219_v61 }
 0x206   :  { %226 = vst [vmem:[%s225_s24] sm:$0x1] %v219_v61  ;;  %271 = vst [vmem:[#allocation2 + $0x5] sm:$0x1] %v270_v62  ;;  %v300_v2 = vadd.f32 %v298_v0, %v297_v58 }
 0x207   :  { %255 = vst [vmem:[%s254_s0] sm:$0x1] %v248_v57  ;;  %286 = vst [vmem:[#allocation2 + $0x6] sm:$0x1] %v285_v63 }
 0x208   :  { %277 = vst [vmem:[%s276_s27] sm:$0x1] %v270_v62  ;;  %301 = vst [vmem:[#allocation2 + $0x7] sm:$0x1] %v300_v2 }
 0x209   :  { %292 = vst [vmem:[%s291_s28] sm:$0x1] %v285_v63 }
 0x20a   :  { %307 = vst [vmem:[%s306_s29] sm:$0x1] %v300_v2 }
 0x20f   :  { %v308_v6 = vld [vmem:[#allocation2] sm:$0xff] }
 0x210   :  { %v309_v7 = vmul.f32 %v308_v6, %v575_v14 }
 0x212   :  { %310 = vadd.xlane.f32.xlu0 %v309_v7 }
 0x216   :  { %141 = vadd.xlane.f32.xlu0 %v140_v8 }
 0x29b   :  { %v311_v12 = vpop.xlane.xlu0 %310 }
 0x29c   :  { %v313_v13 = vsub.f32 1.0, %v311_v12 }
 0x29e   :  { %425 = vlog2.f32 %v313_v13 }
 0x29f   :  { %v142_v16 = vpop.xlane.xlu0 %141 }
 0x2a0   :  { %v146_v17 = vsub.f32 %v145_v15, %v142_v16 }
 0x2a2   :  { %v318_v18 = vsel %vm317_vm2, %v146_v17, 0.0 }
 0x2a3   :  { %319 = vadd.xlane.f32.xlu0 %v318_v18 }
 0x2ab   :  { %v426_v14 = vpop.eup %425 }
 0x2ac   :  { %v315_v19 = vmul.f32 0.6931472, %v426_v14 }
 0x2ae   :  { %v328_v20 = vsel %vm317_vm2, %v315_v19, 0.0 }
 0x2af   :  { %329 = vadd.xlane.f32.xlu0 %v328_v20 }
 0x2b0   :  { %470 = shalt.err (!%p467_p0)
}
 0x2b1   :  { %369 = dma.vmem_to_hbm [thread:$0]  %s364_s1, 512, %s635_s5, [#allocation10], %s509_s25, %s509_s25, %s510_s26   ;;  %vm339_vm3 = vcmp.eq.s32.totalorder %v555_v1, 0  ;;  %vm342_vm4 = vcmp.eq.s32.totalorder %v555_v1, 1  ;;  %v338_v36 = vld [vmem:[#allocation8] sm:$0x1] }
 0x2b2   :  { %s515_s25 = smov [#allocation8]  }
 0x2b3   :  { %s354_s26 = sshll.u32 %s515_s25, 4  ;;  %s355_s26 = int_to_ptr.vmem [resolvable:$true] %s354_s26 }
 0x2b4   :  { %s479_s9 = scalar_lea.vmem %s355_s26, 16  ;;  %s483_s10 = scalar_lea.vmem %s355_s26, 32 }
 0x2b5   :  { %p480_p1 = scmp.ne.s32.totalorder %s355_s26, %s479_s9  ;;  %p484_p2 = scmp.lt.s32.totalorder %s355_s26, %s355_s26 }
 0x2b6   :  { %p485_p3 = scmp.lt.s32.totalorder %s483_s10, %s479_s9 }
 0x2b8   :  { %p486_p4 = por %p485_p3, %p484_p2 }
 0x2ba   :  { %p487_p5 = pnand %p486_p4, %p480_p1 }
 0x32c   :  { %v320_v4 = vpop.xlane.xlu0 %319 }
 0x32d   :  { %v321_v9 = vrot.slane %v320_v4, 4 }
 0x32f   :  { %v322_v21 = vadd.f32 %v321_v9, %v320_v4 }
 0x331   :  { %v323_v22 = vrot.slane %v322_v21, 2 }
 0x333   :  { %v324_v23 = vadd.f32 %v323_v22, %v322_v21 }
 0x335   :  { %v325_v24 = vrot.slane %v324_v23, 1 }
 0x337   :  { %v326_v25 = vadd.f32 %v325_v24, %v324_v23 }
 0x338   :  { %v330_v26 = vpop.xlane.xlu0 %329 }
 0x339   :  { %v331_v27 = vrot.slane %v330_v26, 4  ;;  %402 = vpush %v326_v25 }
 0x33b   :  { %v332_v28 = vadd.f32 %v331_v27, %v330_v26 }
 0x33d   :  { %v333_v29 = vrot.slane %v332_v28, 2 }
 0x33f   :  { %v334_v30 = vadd.f32 %v333_v29, %v332_v28 }
 0x341   :  { %v335_v31 = vrot.slane %v334_v30, 1 }
 0x343   :  { %v336_v32 = vadd.f32 %v335_v31, %v334_v30 }
 0x345   :  { %404 = vpush %v336_v32 }
 0x36a   :  { %s403_s8 = spop %402 }
 0x36b   :  { %v340_v33 = vstv %s403_s8 }
 0x36c   :  { %v341_v35 = vsel %vm339_vm3, %v340_v33, 0.0 }
 0x376   :  { %s405_s5 = spop %404 }
 0x377   :  { %v343_v34 = vstv %s405_s5 }
 0x378   :  { %v344_v37 = vsel %vm342_vm4, %v343_v34, 0.0 }
 0x379   :  { %v345_v38 = vadd.f32 %v344_v37, %v341_v35 }
 0x37b   :  { %v346_v39 = vadd.f32 %v345_v38, %v338_v36 }
 0x37d   :  { %347 = vst [vmem:[#allocation8] sm:$0x1] %v346_v39 }
 0x37e   :  { %490 = shalt.err (!%p487_p5)
}
 0x37f   :  { %357 = dma.vmem_to_hbm [thread:$0]  %s355_s26, 16, %s634_s4, [#allocation7]  }
 0x380   :  { %503 = dma.done.wait [#allocation7], 16  }
 0x381   :  { %504 = vsyncadd [#allocation7], 4294967280 }
 0x382   :  { %505 = dma.done.wait [#allocation10], 512  }
 0x383   :  { %506 = vsyncadd [#allocation10], 4294966784 }
 0x384   :  { %376 = vsyncpa [#allocation6], 1 }
 0x385   :  { %377 = vsyncpa [#allocation7], 1 }
 0x386   :  { %378 = vsyncpa [#allocation10], 1 }

</bundles_post_ra>
